<compile_context>
chip_gen: v7x
topology: tpu7x:2x2x1
jax: 0.10.0
libtpu: 0.0.40
codegen_flags: <defaults>
</compile_context>

<pallas_src>
import numpy as np
import jax
import jax.numpy as jnp
from jax import lax
from jax.experimental import pallas as pl
from jax.experimental.pallas import tpu as pltpu

OUT_BINS = 6                      # nn.AdaptiveAvgPool1d(6)
_TILE_CANDIDATES = (32768, 16384, 8192, 4096, 2048, 1024, 512, 256, 128)
_MIN_BLOCK_BYTES = 2 * 1024 * 1024  # keep per-step DMA blocks >= ~2 MiB


def _round_up(a: int, b: int) -> int:
    return ((a + b - 1) // b) * b


def _adaptive_pool_tables_t(length: int, out_size: int):
    """Transposed 0/1 bin-membership (out, L) and f32 reciprocal lengths (out, 1).

    Bin boundaries match torch.nn.AdaptiveAvgPool1d:
      start_i = floor(i * L / out),  end_i = ceil((i + 1) * L / out).
    """
    memb_t = np.zeros((out_size, length), dtype=np.float32)
    inv = np.zeros((out_size, 1), dtype=np.float32)
    for i in range(out_size):
        start = (i * length) // out_size
        end = -((-(i + 1) * length) // out_size)  # ceil((i+1)*L/out)
        memb_t[i, start:end] = 1.0
        inv[i, 0] = 1.0 / float(end - start)
    return memb_t, inv


def _vmem_budget_and_limit():
    """Generation-aware (budget_for_tiling, vmem_limit_bytes)."""
    cap = None
    try:
        cap = getattr(pltpu.get_tpu_info(), "vmem_capacity_bytes", None)
    except Exception:
        cap = None
    if cap is not None and cap >= 96 * 1024 * 1024:
        # v5e / v6e: 128 MiB physical VMEM -> large streaming tiles are free wins.
        return 56 * 1024 * 1024, 64 * 1024 * 1024
    # v7x (64 MiB per TensorCore) or unknown hardware: stay conservative.
    return 22 * 1024 * 1024, 48 * 1024 * 1024


def _pick_tile_m(m_f: int, length_f: int, out_rows: int,
                 in_itemsize: int, out_itemsize: int, budget: int) -> int:
    """Largest 128-multiple row tile whose real on-chip footprint fits `budget`.

    Accounts for lane padding of the input block, the resident (double-buffered)
    membership / reciprocal tables, and the double-buffered output tile.
    """
    lane_l = _round_up(length_f, 128)
    out_sub = _round_up(out_rows, 8)
    fixed = 2 * out_sub * lane_l * in_itemsize + 2 * out_sub * 128 * 4

    cap_rows = (m_f // 128) * 128                       # tile <= number of rows
    # keep >= ~8 grid steps (megacore sharding on v7x), but never shrink the
    # per-step HBM block below ~2 MiB (DMA / per-step-overhead efficiency).
    min_rows_for_block = _round_up(pl.cdiv(_MIN_BLOCK_BYTES, lane_l * in_itemsize), 128)
    cap_steps = max(_round_up(pl.cdiv(m_f, 8), 128), min_rows_for_block)
    tile_cap = max(128, min(cap_rows, cap_steps))

    for t in _TILE_CANDIDATES:
        if t > tile_cap:
            continue
        need = (fixed
                + 2 * t * lane_l * in_itemsize     # double-buffered input tile
                + 2 * out_sub * t * out_itemsize)  # double-buffered output tile
        if need <= budget:
            return t
    return 128


def _pool_kernel(x_ref, memb_t_ref, inv_ref, o_ref):
    # x_ref:      (TILE_M, Lf)   input rows for this grid step
    # memb_t_ref: (OUTf, Lf)     0/1 membership (block-diagonal when lane-folded)
    # inv_ref:    (OUTf, 1)      f32 reciprocal bin lengths, resident
    # o_ref:      (OUTf, TILE_M) transposed, lane-dense output tile
    acc = lax.dot_general(
        memb_t_ref[...], x_ref[...],
        dimension_numbers=(((1,), (1,)), ((), ())),   # contract Lf on both operands
        preferred_element_type=jnp.float32,
    )  # (OUTf, TILE_M), f32 accumulation on the MXU
    o_ref[...] = (acc * inv_ref[...]).astype(o_ref.dtype)


def flat_avg_pool(x: jnp.ndarray, out_size: int = OUT_BINS) -> jnp.ndarray:
    """x: (N, C, L) -> (N, C * out_size) == Flatten(AdaptiveAvgPool1d(out_size)(x))."""
    n, c, length = x.shape
    m = n * c

    # --- small-L lane folding: fold g rows into one lane-dense row of g*L -----
    g = 1
    if length < 128:
        gmax = min(128 // length, max(1, m // 8))   # keep >= 8 folded rows
        for cand in range(gmax, 1, -1):
            if m % cand == 0:
                g = cand
                break
    length_f = g * length
    m_f = m // g
    out_rows = g * out_size

    memb_t_np, inv_np = _adaptive_pool_tables_t(length, out_size)
    if g > 1:
        memb_t_np = np.kron(np.eye(g, dtype=np.float32), memb_t_np)  # (g*OUT, g*L)
        inv_np = np.tile(inv_np, (g, 1))                             # (g*OUT, 1)
    memb_t = jnp.asarray(memb_t_np, dtype=x.dtype)      # 0/1: exact in any dtype
    inv_len = jnp.asarray(inv_np, dtype=jnp.float32)    # keep the scale in f32

    x2 = x.reshape(m_f, length_f)                       # free row-major reshape

    in_itemsize = jnp.dtype(x.dtype).itemsize
    budget, vmem_limit = _vmem_budget_and_limit()
    if m_f >= 128:
        tile_m = _pick_tile_m(m_f, length_f, out_rows, in_itemsize, in_itemsize, budget)
    else:
        tile_m = m_f                                    # single full-array block
    grid_m = pl.cdiv(m_f, tile_m)
    m_out = grid_m * tile_m                             # lane-dense, unmasked stores

    out_t = pl.pallas_call(
        _pool_kernel,
        out_shape=jax.ShapeDtypeStruct((out_rows, m_out), x.dtype),
        grid=(grid_m,),
        in_specs=[
            pl.BlockSpec((tile_m, length_f), lambda i: (i, 0)),
            pl.BlockSpec((out_rows, length_f), lambda i: (0, 0)),
            pl.BlockSpec((out_rows, 1), lambda i: (0, 0)),
        ],
        out_specs=pl.BlockSpec((out_rows, tile_m), lambda i: (0, i)),
        compiler_params=pltpu.CompilerParams(
            dimension_semantics=("parallel",),
            vmem_limit_bytes=vmem_limit,
        ),
    )(x2, memb_t, inv_len)

    # Columns >= m_f come from the ragged last block's unspecified pad rows;
    # slice them off, then unfold (g, OUT, m_f) -> (M, OUT) -> (N, C*OUT).
    pooled_t = out_t[:, :m_f]                                        # (g*OUT, m_f)
    pooled = pooled_t.reshape(g, out_size, m_f).transpose(2, 0, 1).reshape(m, out_size)
    return pooled.reshape(n, c * out_size)


def _reference(x: jnp.ndarray, out_size: int = OUT_BINS) -> jnp.ndarray:
    """Pure-JAX reference of AdaptiveAvgPool1d + Flatten."""
    n, c, length = x.shape
    cols = []
    for i in range(out_size):
        start = (i * length) // out_size
        end = -((-(i + 1) * length) // out_size)
        cols.append(jnp.mean(x[..., start:end], axis=-1))
    pooled = jnp.stack(cols, axis=-1)  # (N, C, out_size)
    return pooled.reshape(n, c * out_size)


if __name__ == "__main__":
    key = jax.random.PRNGKey(0)
    # Primary small NCL input consistent with AdaptiveAvgPool1d: (2, 4, 16).
    x = jax.random.normal(key, (2, 4, 16), dtype=jnp.float32)
    out = jax.block_until_ready(flat_avg_pool(x))
    ref = _reference(x)
    assert out.shape == (2, 4 * OUT_BINS), out.shape
    np.testing.assert_allclose(np.asarray(out), np.asarray(ref), rtol=1e-5, atol=1e-5)

    # Extra coverage: lane-folded small-L path and the multi-step ragged path.
    for shape in ((2, 64, 16), (2, 96, 200)):
        xs = jax.random.normal(jax.random.PRNGKey(1), shape, dtype=jnp.float32)
        o = jax.block_until_ready(flat_avg_pool(xs))
        np.testing.assert_allclose(np.asarray(o), np.asarray(_reference(xs)),
                                   rtol=1e-4, atol=1e-5)

    print("KERNEL_OK")
</pallas_src>

<mosaic_0001>
module attributes {stable_mosaic.version = 11 : i64} {
  func.func @_pool_kernel(%arg0: i32, %arg1: memref<8x16xf32, #tpu.memory_space<vmem>>, %arg2: memref<6x16xf32, #tpu.memory_space<vmem>>, %arg3: memref<6x1xf32, #tpu.memory_space<vmem>>, %arg4: memref<6x8xf32, #tpu.memory_space<vmem>>) attributes {dimension_semantics = [#tpu.dimension_semantics<parallel>], iteration_bounds = array<i64: 1>, scalar_prefetch = 0 : i64, scratch_operands = 0 : i64, tpu.core_type = #tpu.core_type<tc>, window_params = [{transform_indices = @transform_0, window_bounds = array<i64: 8, 16>}, {pipeline_mode = #tpu.pipeline_mode<synchronous>, transform_indices = @transform_1, window_bounds = array<i64: 6, 16>}, {pipeline_mode = #tpu.pipeline_mode<synchronous>, transform_indices = @transform_2, window_bounds = array<i64: 6, 1>}, {transform_indices = @transform_3, window_bounds = array<i64: 6, 8>}]} {
    %c0 = arith.constant 0 : index
    %c0_0 = arith.constant 0 : index
    %0 = vector.load %arg2[%c0, %c0_0] : memref<6x16xf32, #tpu.memory_space<vmem>>, vector<6x16xf32>
    %c0_1 = arith.constant 0 : index
    %c0_2 = arith.constant 0 : index
    %1 = vector.load %arg1[%c0_1, %c0_2] : memref<8x16xf32, #tpu.memory_space<vmem>>, vector<8x16xf32>
    %cst = arith.constant dense<0.000000e+00> : vector<6x8xf32>
    %2 = tpu.matmul %0, %1, %cst {dimension_numbers = #tpu.dot_dimension_numbers<[1], [1], [0], [0], [0, 0, 1, 0], [], []>} : vector<6x16xf32>, vector<8x16xf32>, vector<6x8xf32> -> vector<6x8xf32>
    %c0_3 = arith.constant 0 : index
    %c0_4 = arith.constant 0 : index
    %3 = vector.load %arg3[%c0_3, %c0_4] : memref<6x1xf32, #tpu.memory_space<vmem>>, vector<6x1xf32>
    %4 = vector.broadcast %3 : vector<6x1xf32> to vector<6x8xf32>
    %5 = arith.mulf %2, %4 : vector<6x8xf32>
    %c0_5 = arith.constant 0 : index
    %c0_6 = arith.constant 0 : index
    %6 = vector.load %arg4[%c0_5, %c0_6] : memref<6x8xf32, #tpu.memory_space<vmem>>, vector<6x8xf32>
    tpu.vector_store %arg4[%c0_5, %c0_6], %5 {strides = array<i32>} : memref<6x8xf32, #tpu.memory_space<vmem>>, vector<6x8xf32>,
    return
  }
  func.func @transform_0(%arg0: i32) -> (i32, i32) {
    %c0_i32 = arith.constant 0 : i32
    %c0_i32_0 = arith.constant 0 : i32
    return %arg0, %c0_i32 : i32, i32
  }
  func.func @transform_1(%arg0: i32) -> (i32, i32) {
    %c0_i32 = arith.constant 0 : i32
    %c0_i32_0 = arith.constant 0 : i32
    %c0_i32_1 = arith.constant 0 : i32
    return %c0_i32, %c0_i32_0 : i32, i32
  }
  func.func @transform_2(%arg0: i32) -> (i32, i32) {
    %c0_i32 = arith.constant 0 : i32
    %c0_i32_0 = arith.constant 0 : i32
    %c0_i32_1 = arith.constant 0 : i32
    return %c0_i32, %c0_i32_0 : i32, i32
  }
  func.func @transform_3(%arg0: i32) -> (i32, i32) {
    %c0_i32 = arith.constant 0 : i32
    %c0_i32_0 = arith.constant 0 : i32
    return %c0_i32, %arg0 : i32, i32
  }
}

</mosaic_0001>

<bundles_post_ra>
// kernel: tpu_custom_call.1
= control target key start
LH: loop header
LB: loop body
LE: loop exit
PB: predicated region body
PF: predicated region fallthrough
CT: control target
= control target key end

     0   :  { %8 = vsyncpa [#allocation3], 0  ;;  %s248_s0 = inlined_call_operand.vmem [shape: f32[8,16], index: 0, kind: input, shape index: {}]   ;;  %s249_s1 = inlined_call_operand.hbm [shape: f32[6,16], index: 1, kind: input, shape index: {}]   ;;  %s250_s2 = inlined_call_operand.vmem [shape: f32[6,1], index: 2, kind: input, shape index: {}]   ;;  %s251_s3 = inlined_call_operand.hbm [shape: f32[6,8], index: 3, kind: output, shape index: {}]  }
   0x1   :  { %9 = vsyncpa [#allocation4], 0  ;;  %s193_s12 = smov [#allocation2]   ;;  %s145_s16 = scalar_lea.hbm %s249_s1, 128 }
   0x2   :  { %s18_s13 = sshll.u32 %s193_s12, 4  ;;  %p146_p0 = scmp.ne.s32.totalorder %s249_s1, %s145_s16  ;;  %s19_s13 = int_to_ptr.vmem [resolvable:$true] %s18_s13 }
   0x3   :  { %p149_p1 = scmp.lt.u32.totalorder %s145_s16, %s249_s1 }
   0x5   :  { %p151_p2 = pnand %p149_p1, %p146_p0 }
   0x7   :  { %154 = shalt.err (!%p151_p2)
}
   0x8   :  { %s155_s21 = scalar_lea.vmem %s19_s13, 128  ;;  %p160_p4 = scmp.lt.s32.totalorder %s19_s13, %s19_s13 }
   0x9   :  { %p156_p3 = scmp.ne.s32.totalorder %s19_s13, %s155_s21  ;;  %p161_p5 = scmp.lt.s32.totalorder %s155_s21, %s155_s21 }
   0xb   :  { %p162_p6 = por %p161_p5, %p160_p4 }
   0xd   :  { %p163_p7 = pnand %p162_p6, %p156_p3 }
   0xf   :  { %166 = shalt.err (!%p163_p7)
}
  0x10   :  { %21 = dma.hbm_to_vmem [thread:$0]  %s249_s1, 128, %s19_s13, [#allocation3]  }
  0x11   :  { %189 = dma.done.wait [#allocation3], 128  }
  0x12   :  { %190 = vsyncadd [#allocation3], 4294967168  ;;  %v194_v0 = vmov 0.0   ;;  %vm195_vm0 = vmmov 0   ;;  %v196_v1 = vmov 0   ;;  %vm29_vm1 = vcmask 130048  }
  0x13   :  { %134 = vmatprep.subr.mxu0 %v194_v0  ;;  %136 = vmatprep.mubr.msk.f32.mxu0 %vm195_vm0, %v194_v0  ;;  %v28_v2 = vld [vmem:[%s248_s0] sm:$0xff]  ;;  %s197_s1 = smov [#allocation5]   ;;  %vm113_vm2 = vcmask 62464  }
  0x14   :  { %144 = vset.pattern.permute.xlu0 %v196_v1  ;;  %v106_v3 = vld [vmem:[%s250_s2] sm:$0x3f]  ;;  %135 = vmatpush3.xpose.msk.msra.mxu0 %vm29_vm1, %v28_v2  ;;  %s121_s28 = sshll.u32 %s197_s1, 4  ;;  %s122_s28 = int_to_ptr.vmem [resolvable:$true] %s121_s28 }
  0x15   :  { %v27_v4 = vld [vmem:[#allocation2] sm:$0x3f]  ;;  %109 = vperm.xlu0 %144, %v106_v3   ;;  %s167_s29 = scalar_lea.vmem %s122_s28, 128  ;;  %p172_p9 = scmp.lt.s32.totalorder %s122_s28, %s122_s28 }
  0x16   :  { %p168_p8 = scmp.ne.s32.totalorder %s122_s28, %s167_s29  ;;  %p173_p10 = scmp.lt.s32.totalorder %s167_s29, %s167_s29 }
  0x17   :  { %137 = vmatmul.mubr.msk.f32.vlgmr.msra.gmra.mrb[0].mxu0 %vm29_vm1, %v27_v4 }
  0x18   :  { %p174_p11 = por %p173_p10, %p172_p9 }
  0x1a   :  { %p175_p12 = pnand %p174_p11, %p168_p8 }
  0x94   :  { %v110_v5 = vpop.permute.xlu0 %109 }
  0xea   :  { %v102_v6 = vpop.f32.mrb[0].mxu0 }
  0xeb   :  { %v112_v7 = vmul.f32 %v110_v5, %v102_v6  ;;  %v138_v8 = vpop.f32.mrb[1].mxu0 }
  0xed   :  { %114 = vst.msk [vmem:[#allocation5] sm:$0x3f] %vm113_vm2, %v112_v7 }
  0xee   :  { %178 = shalt.err (!%p175_p12)
}
  0xef   :  { %s179_s30 = scalar_lea.hbm %s251_s3, 128 }
  0xf0   :  { %p180_p13 = scmp.ne.s32.totalorder %s251_s3, %s179_s30  ;;  %p183_p0 = scmp.lt.u32.totalorder %s179_s30, %s251_s3 }
  0xf2   :  { %p185_p1 = pnand %p183_p0, %p180_p13 }
  0xf4   :  { %188 = shalt.err (!%p185_p1)
}
  0xf5   :  { %124 = dma.vmem_to_hbm [thread:$0]  %s122_s28, 128, %s251_s3, [#allocation4]  }
  0xf6   :  { %191 = dma.done.wait [#allocation4], 128  }
  0xf7   :  { %192 = vsyncadd [#allocation4], 4294967168 }
  0xf8   :  { %128 = vsyncpa [#allocation3], 1 }
  0xf9   :  { %129 = vsyncpa [#allocation4], 1 }

</bundles_post_ra>
